<compile_context>
chip_gen: v7x
topology: tpu7x:2x2x1
jax: 0.10.0
libtpu: 0.0.40
codegen_flags: <defaults>
</compile_context>

<pallas_src>
import functools

import jax
import jax.numpy as jnp
from jax.experimental import pallas as pl
from jax.experimental.pallas import tpu as pltpu


def _round_up(n, m):
    return ((n + m - 1) // m) * m


def mlp_kernel(x_ref, w1_ref, b1_ref, w2_ref, b2_ref, w3_ref, b3_ref, o_ref):
    # x arrives in f32; cast to bf16 in-kernel right before the MXU.
    x = x_ref[...].astype(w1_ref.dtype)
    # layer 1: bf16 matmul, f32 accumulate, f32 bias + ReLU, fused bf16 cast
    h1 = jnp.dot(x, w1_ref[...], preferred_element_type=jnp.float32)
    h1 = jnp.maximum(h1 + b1_ref[...], 0.0).astype(w2_ref.dtype)
    # layer 2
    h2 = jnp.dot(h1, w2_ref[...], preferred_element_type=jnp.float32)
    h2 = jnp.maximum(h2 + b2_ref[...], 0.0).astype(w3_ref.dtype)
    # output layer (no activation)
    out = jnp.dot(h2, w3_ref[...], preferred_element_type=jnp.float32)
    o_ref[...] = (out + b3_ref[...]).astype(o_ref.dtype)


def prepare_params(w1, b1, w2, b2, w3, b3):
    """One-time parameter prep (do at init, NOT per forward call):
    weights -> bf16 MXU operands, biases -> f32 (1, H) row vectors."""
    row = lambda b: jnp.asarray(b, jnp.float32).reshape(1, -1)
    return (jnp.asarray(w1, jnp.bfloat16), row(b1),
            jnp.asarray(w2, jnp.bfloat16), row(b2),
            jnp.asarray(w3, jnp.bfloat16), row(b3))


@functools.partial(jax.jit, static_argnames=("block_b",))
def mlp_forward(x, params, *, block_b=512):
    """y = relu(relu(x @ w1 + b1) @ w2 + b2) @ w3 + b3 (f32 in / f32 out)."""
    w1, b1, w2, b2, w3, b3 = params
    B, Din = x.shape
    H1 = w1.shape[1]
    H2 = w2.shape[1]
    Dout = w3.shape[1]

    # Batch tile: multiple of 16 (bf16 packs 16 rows/vreg), capped by block_b.
    TB = min(_round_up(block_b, 16), _round_up(B, 16))
    # Prefer >=2 grid steps so v7x megacore can shard the batch axis
    # (no-op on v5e/v6e, which have a single TensorCore).
    if _round_up(B, TB) // TB < 2 and TB >= 32:
        TB = _round_up((TB + 1) // 2, 16)
    B_p = _round_up(B, TB)

    # Only the batch dim is padded; feature dims stay at their true widths.
    xp = x if B_p == B else jnp.pad(x, ((0, B_p - B), (0, 0)))

    grid = (B_p // TB,)

    # Weights/biases: constant block index (VMEM-resident across the grid) and
    # single-buffered — no point double-buffering data that never changes.
    def resident(a):
        return pl.BlockSpec(a.shape, lambda i: (0,) * a.ndim,
                            pipeline_mode=pl.Buffered(1))

    # Explicit scoped-VMEM budget: resident weights (1x) + double-buffered
    # x/out tiles + layer intermediates, with 2x margin; clamp to 64 MiB so it
    # is safe on every generation (v7x has 64 MiB/TC physical).
    resident_bytes = ((w1.size + w2.size + w3.size) * 2
                      + (b1.size + b2.size + b3.size) * 4)
    stream_bytes = 2 * TB * Din * 4 + 2 * TB * Dout * 4
    interm_bytes = TB * (H1 + H2) * (4 + 2)
    vmem_limit = int(min(max(2 * (resident_bytes + stream_bytes + interm_bytes),
                             32 * 1024 * 1024),
                         64 * 1024 * 1024))

    out_p = pl.pallas_call(
        mlp_kernel,
        out_shape=jax.ShapeDtypeStruct((B_p, Dout), jnp.float32),
        grid_spec=pltpu.PrefetchScalarGridSpec(
            num_scalar_prefetch=0,
            grid=grid,
            in_specs=[
                pl.BlockSpec((TB, Din), lambda i: (i, 0)),   # streamed x tile (f32)
                resident(w1), resident(b1),
                resident(w2), resident(b2),
                resident(w3), resident(b3),
            ],
            out_specs=pl.BlockSpec((TB, Dout), lambda i: (i, 0)),
        ),
        compiler_params=pltpu.CompilerParams(
            dimension_semantics=("parallel",),
            vmem_limit_bytes=vmem_limit,
        ),
    )(xp, w1, b1, w2, b2, w3, b3)

    # Strip batch padding only (output already has the true channel width).
    return out_p if B_p == B else out_p[:B]


def init_linear(key, fan_in, fan_out):
    # Deterministic init mimicking nn.Linear: U(-1/sqrt(fan_in), 1/sqrt(fan_in))
    kw, kb = jax.random.split(key)
    bound = 1.0 / jnp.sqrt(fan_in)
    w = jax.random.uniform(kw, (fan_in, fan_out), jnp.float32, -bound, bound)
    b = jax.random.uniform(kb, (fan_out,), jnp.float32, -bound, bound)
    return w, b


def ref_forward_bf16(x, w1, b1, w2, b2, w3, b3):
    # Mirrors the kernel's numerics: bf16 matmul operands, f32 accumulation.
    cd = jnp.bfloat16
    h = jnp.dot(x.astype(cd), w1.astype(cd), preferred_element_type=jnp.float32)
    h = jnp.maximum(h + b1, 0.0)
    h = jnp.dot(h.astype(cd), w2.astype(cd), preferred_element_type=jnp.float32)
    h = jnp.maximum(h + b2, 0.0)
    out = jnp.dot(h.astype(cd), w3.astype(cd), preferred_element_type=jnp.float32)
    return out + b3


def ref_forward_f32(x, w1, b1, w2, b2, w3, b3):
    h = jnp.maximum(x @ w1 + b1, 0.0)
    h = jnp.maximum(h @ w2 + b2, 0.0)
    return h @ w3 + b3


if __name__ == "__main__":
    # Small shapes consistent with the module's forward.
    B = 40                      # not a multiple of the tile -> exercises padding
    input_feature_dim = 32
    hidden_dim1 = 64
    hidden_dim2 = 64
    output_dim = 16

    key = jax.random.PRNGKey(0)
    kx, k1, k2, k3 = jax.random.split(key, 4)

    x = jax.random.normal(kx, (B, input_feature_dim), jnp.float32)
    w1, b1 = init_linear(k1, input_feature_dim, hidden_dim1)
    w2, b2 = init_linear(k2, hidden_dim1, hidden_dim2)
    w3, b3 = init_linear(k3, hidden_dim2, output_dim)

    # One-time parameter prep (hoisted out of the per-call path).
    params = prepare_params(w1, b1, w2, b2, w3, b3)

    # Default block_b; the TB logic shrinks it so the grid still has >=2 steps.
    out = mlp_forward(x, params)
    jax.block_until_ready(out)
    assert out.shape == (B, output_dim)

    # Tight check vs a reference with identical (bf16-operand) numerics.
    ref_bf16 = ref_forward_bf16(x, w1, b1, w2, b2, w3, b3)
    assert jnp.allclose(out, ref_bf16, atol=1e-3, rtol=1e-3), (
        float(jnp.max(jnp.abs(out - ref_bf16))))

    # Loose check vs the exact f32 PyTorch-equivalent forward.
    ref_f32 = ref_forward_f32(x, w1, b1, w2, b2, w3, b3)
    assert jnp.allclose(out, ref_f32, atol=3e-2, rtol=3e-2), (
        float(jnp.max(jnp.abs(out - ref_f32))))

    print("KERNEL_OK")
</pallas_src>

<mosaic_0001>
module attributes {stable_mosaic.version = 11 : i64} {
  func.func @mlp_kernel(%arg0: i32, %arg1: memref<32x32xf32, #tpu.memory_space<vmem>>, %arg2: memref<32x64xbf16, #tpu.memory_space<vmem>>, %arg3: memref<1x64xf32, #tpu.memory_space<vmem>>, %arg4: memref<64x64xbf16, #tpu.memory_space<vmem>>, %arg5: memref<1x64xf32, #tpu.memory_space<vmem>>, %arg6: memref<64x16xbf16, #tpu.memory_space<vmem>>, %arg7: memref<1x16xf32, #tpu.memory_space<vmem>>, %arg8: memref<32x16xf32, #tpu.memory_space<vmem>>) attributes {dimension_semantics = [#tpu.dimension_semantics<parallel>], iteration_bounds = array<i64: 2>, scalar_prefetch = 0 : i64, scratch_operands = 0 : i64, tpu.core_type = #tpu.core_type<tc>, window_params = [{transform_indices = @transform_0, window_bounds = array<i64: 32, 32>}, {pipeline_mode = #tpu.pipeline_mode<synchronous>, transform_indices = @transform_1, window_bounds = array<i64: 32, 64>}, {pipeline_mode = #tpu.pipeline_mode<synchronous>, transform_indices = @transform_2, window_bounds = array<i64: 1, 64>}, {pipeline_mode = #tpu.pipeline_mode<synchronous>, transform_indices = @transform_3, window_bounds = array<i64: 64, 64>}, {pipeline_mode = #tpu.pipeline_mode<synchronous>, transform_indices = @transform_4, window_bounds = array<i64: 1, 64>}, {pipeline_mode = #tpu.pipeline_mode<synchronous>, transform_indices = @transform_5, window_bounds = array<i64: 64, 16>}, {pipeline_mode = #tpu.pipeline_mode<synchronous>, transform_indices = @transform_6, window_bounds = array<i64: 1, 16>}, {transform_indices = @transform_7, window_bounds = array<i64: 32, 16>}]} {
    %c0 = arith.constant 0 : index
    %c0_0 = arith.constant 0 : index
    %0 = vector.load %arg1[%c0, %c0_0] : memref<32x32xf32, #tpu.memory_space<vmem>>, vector<32x32xf32>
    %1 = arith.truncf %0 : vector<32x32xf32> to vector<32x32xbf16>
    %c0_1 = arith.constant 0 : index
    %c0_2 = arith.constant 0 : index
    %2 = vector.load %arg2[%c0_1, %c0_2] : memref<32x64xbf16, #tpu.memory_space<vmem>>, vector<32x64xbf16>
    %cst = arith.constant dense<0.000000e+00> : vector<32x64xf32>
    %3 = tpu.matmul %1, %2, %cst {dimension_numbers = #tpu.dot_dimension_numbers<[1], [0], [0], [1], [0, 0, 1, 1], [], []>} : vector<32x32xbf16>, vector<32x64xbf16>, vector<32x64xf32> -> vector<32x64xf32>
    %c0_3 = arith.constant 0 : index
    %c0_4 = arith.constant 0 : index
    %4 = vector.load %arg3[%c0_3, %c0_4] : memref<1x64xf32, #tpu.memory_space<vmem>>, vector<1x64xf32>
    %5 = vector.broadcast %4 : vector<1x64xf32> to vector<32x64xf32>
    %6 = arith.addf %3, %5 : vector<32x64xf32>
    %cst_5 = arith.constant 0.000000e+00 : f32
    %7 = vector.broadcast %cst_5 : f32 to vector<32x64xf32>
    %8 = arith.maximumf %6, %7 : vector<32x64xf32>
    %9 = arith.truncf %8 : vector<32x64xf32> to vector<32x64xbf16>
    %c0_6 = arith.constant 0 : index
    %c0_7 = arith.constant 0 : index
    %10 = vector.load %arg4[%c0_6, %c0_7] : memref<64x64xbf16, #tpu.memory_space<vmem>>, vector<64x64xbf16>
    %cst_8 = arith.constant dense<0.000000e+00> : vector<32x64xf32>
    %11 = tpu.matmul %9, %10, %cst_8 {dimension_numbers = #tpu.dot_dimension_numbers<[1], [0], [0], [1], [0, 0, 1, 1], [], []>} : vector<32x64xbf16>, vector<64x64xbf16>, vector<32x64xf32> -> vector<32x64xf32>
    %c0_9 = arith.constant 0 : index
    %c0_10 = arith.constant 0 : index
    %12 = vector.load %arg5[%c0_9, %c0_10] : memref<1x64xf32, #tpu.memory_space<vmem>>, vector<1x64xf32>
    %13 = vector.broadcast %12 : vector<1x64xf32> to vector<32x64xf32>
    %14 = arith.addf %11, %13 : vector<32x64xf32>
    %cst_11 = arith.constant 0.000000e+00 : f32
    %15 = vector.broadcast %cst_11 : f32 to vector<32x64xf32>
    %16 = arith.maximumf %14, %15 : vector<32x64xf32>
    %17 = arith.truncf %16 : vector<32x64xf32> to vector<32x64xbf16>
    %c0_12 = arith.constant 0 : index
    %c0_13 = arith.constant 0 : index
    %18 = vector.load %arg6[%c0_12, %c0_13] : memref<64x16xbf16, #tpu.memory_space<vmem>>, vector<64x16xbf16>
    %cst_14 = arith.constant dense<0.000000e+00> : vector<32x16xf32>
    %19 = tpu.matmul %17, %18, %cst_14 {dimension_numbers = #tpu.dot_dimension_numbers<[1], [0], [0], [1], [0, 0, 1, 1], [], []>} : vector<32x64xbf16>, vector<64x16xbf16>, vector<32x16xf32> -> vector<32x16xf32>
    %c0_15 = arith.constant 0 : index
    %c0_16 = arith.constant 0 : index
    %20 = vector.load %arg7[%c0_15, %c0_16] : memref<1x16xf32, #tpu.memory_space<vmem>>, vector<1x16xf32>
    %21 = vector.broadcast %20 : vector<1x16xf32> to vector<32x16xf32>
    %22 = arith.addf %19, %21 : vector<32x16xf32>
    %c0_17 = arith.constant 0 : index
    %c0_18 = arith.constant 0 : index
    %23 = vector.load %arg8[%c0_17, %c0_18] : memref<32x16xf32, #tpu.memory_space<vmem>>, vector<32x16xf32>
    tpu.vector_store %arg8[%c0_17, %c0_18], %22 {strides = array<i32>} : memref<32x16xf32, #tpu.memory_space<vmem>>, vector<32x16xf32>,
    return
  }
  func.func @transform_0(%arg0: i32) -> (i32, i32) {
    %c0_i32 = arith.constant 0 : i32
    %c0_i32_0 = arith.constant 0 : i32
    return %arg0, %c0_i32 : i32, i32
  }
  func.func @transform_1(%arg0: i32) -> (i32, i32) {
    %c0_i32 = arith.constant 0 : i32
    %c0_i32_0 = arith.constant 0 : i32
    %c0_i32_1 = arith.constant 0 : i32
    return %c0_i32, %c0_i32_0 : i32, i32
  }
  func.func @transform_2(%arg0: i32) -> (i32, i32) {
    %c0_i32 = arith.constant 0 : i32
    %c0_i32_0 = arith.constant 0 : i32
    %c0_i32_1 = arith.constant 0 : i32
    return %c0_i32, %c0_i32_0 : i32, i32
  }
  func.func @transform_3(%arg0: i32) -> (i32, i32) {
    %c0_i32 = arith.constant 0 : i32
    %c0_i32_0 = arith.constant 0 : i32
    %c0_i32_1 = arith.constant 0 : i32
    return %c0_i32, %c0_i32_0 : i32, i32
  }
  func.func @transform_4(%arg0: i32) -> (i32, i32) {
    %c0_i32 = arith.constant 0 : i32
    %c0_i32_0 = arith.constant 0 : i32
    %c0_i32_1 = arith.constant 0 : i32
    return %c0_i32, %c0_i32_0 : i32, i32
  }
  func.func @transform_5(%arg0: i32) -> (i32, i32) {
    %c0_i32 = arith.constant 0 : i32
    %c0_i32_0 = arith.constant 0 : i32
    %c0_i32_1 = arith.constant 0 : i32
    return %c0_i32, %c0_i32_0 : i32, i32
  }
  func.func @transform_6(%arg0: i32) -> (i32, i32) {
    %c0_i32 = arith.constant 0 : i32
    %c0_i32_0 = arith.constant 0 : i32
    %c0_i32_1 = arith.constant 0 : i32
    return %c0_i32, %c0_i32_0 : i32, i32
  }
  func.func @transform_7(%arg0: i32) -> (i32, i32) {
    %c0_i32 = arith.constant 0 : i32
    %c0_i32_0 = arith.constant 0 : i32
    return %arg0, %c0_i32 : i32, i32
  }
}

</mosaic_0001>

<bundles_post_ra>
// kernel: mlp_forward.1
= control target key start
LH: loop header
LB: loop body
LE: loop exit
PB: predicated region body
PF: predicated region fallthrough
CT: control target
= control target key end

     0   :  { %s774_s24 = smov 0   ;;  %s841_s0 = inlined_call_operand.vmem [shape: f32[64,32], index: 0, kind: input, shape index: {}]   ;;  %s842_s1 = inlined_call_operand.vmem [shape: bf16[32,64], index: 1, kind: input, shape index: {}]   ;;  %s843_s2 = inlined_call_operand.vmem [shape: f32[1,64], index: 2, kind: input, shape index: {}]   ;;  %s844_s3 = inlined_call_operand.vmem [shape: bf16[64,64], index: 3, kind: input, shape index: {}]   ;;  %s845_s4 = inlined_call_operand.vmem [shape: f32[1,64], index: 4, kind: input, shape index: {}]   ;;  %s846_s5 = inlined_call_operand.vmem [shape: bf16[64,16], index: 5, kind: input, shape index: {}]   ;;  %s847_s6 = inlined_call_operand.vmem [shape: f32[1,16], index: 6, kind: input, shape index: {}]   ;;  %s848_s7 = inlined_call_operand.vmem [shape: f32[64,16], index: 7, kind: output, shape index: {}]  }
   0x1 LB: > { %s630_s25 = sadd.s32 4294967295, %s732_s24   ;;  %p634_p0 = scmp.ge.s32.totalorder %s732_s24, 1  ;;  %s732_s24 = sphi %s774_s24, %s17_s24  }
   0x2   : > { %p238_p1 = scmp.lt.s32.totalorder %s732_s24, 3 }
   0x4   : > { %p239_p2 = pnand %p634_p0, %p238_p1 }
   0x5   : > { %v716_v0 = vld [vmem:[%s842_s1] sm:$0xff] (!%p239_p2)   ;;  %s635_s28 = sshll.u32 (!%p239_p2), %s630_s25, 2  ;;  %v717_v1 = vld [vmem:[%s842_s1 + $0x8] sm:$0xff] (!%p239_p2)   ;;  %vm312_vm0 = vcmask (!%p239_p2), 261120   ;;  %v720_v10 = vld [vmem:[%s844_s3 + $0x10] sm:$0xff] (!%p239_p2)   ;;  %vm413_vm1 = vcmask (!%p239_p2), 523264  }
   0x6   : > { %242 = sbr.rel (%p239_p2) target bundleno = 682 (0x2aa), region = 48  ;;  %p271_p3 = scmp.lt.s32.totalorder (!%p239_p2), %s635_s28, 7  ;;  %676 = vmatprep.subr.bf16.mxu0 (!%p239_p2), %v716_v0  ;;  %v718_v2 = vld [vmem:[%s844_s3] sm:$0xff] (!%p239_p2)   ;;  %v719_v3 = vld [vmem:[%s844_s3 + $0x8] sm:$0xff] (!%p239_p2)   ;;  %v721_v11 = vld [vmem:[%s844_s3 + $0x18] sm:$0xff] (!%p239_p2)   ;;  %vm569_vm2 = vcmask (!%p239_p2), 130048  }
   0x7   : > { %677 = vmatpush3.bf16.msra.mxu0 (!%p239_p2), %v716_v0  ;;  %684 = vmatprep.subr.bf16.mxu1 (!%p239_p2), %v718_v2  ;;  %v722_v12 = vld [vmem:[%s846_s5] sm:$0xff] (!%p239_p2)   ;;  %v723_v13 = vld [vmem:[%s846_s5 + $0x8] sm:$0xff] (!%p239_p2)   ;;  %v724_v29 = vld [vmem:[%s846_s5 + $0x10] sm:$0xff] (!%p239_p2)  }
   0x8   : > { %678 = vmatprep.subr.bf16.mxu0 (!%p239_p2), %v717_v1  ;;  %685 = vmatpush3.bf16.msra.mxu1 (!%p239_p2), %v718_v2  ;;  %v639_v14 = vld [vmem:[%s843_s2] ss:$0 sm:$0xff] (!%p239_p2)  ;;  %v725_v30 = vld [vmem:[%s846_s5 + $0x18] sm:$0xff] (!%p239_p2)  }
   0x9   : > { %686 = vmatprep.subr.bf16.mxu1 (!%p239_p2), %v719_v3  ;;  %v644_v31 = vld [vmem:[%s845_s4] ss:$0 sm:$0xff] (!%p239_p2) }
   0xa   : > { %v651_v46 = vld [vmem:[%s847_s6] ss:$0 sm:$0xff] (!%p239_p2) }
   0xb   : > { %679 = vmatpush3.bf16.msra.mxu0 (!%p239_p2), %v717_v1 }
   0xc   : > { %687 = vmatpush3.bf16.msra.mxu1 (!%p239_p2), %v719_v3  ;;  %696 = vmatprep.subr.bf16.mxu0 (!%p239_p2), %v722_v12 }
   0xd   : > { %s850_s28 = smov (!%p271_p3, %s635_s28), 7  ;;  %688 = vmatprep.subr.bf16.mxu1 %v720_v10 }
   0xe   : > { %s636_s12 = sshll.u32 %s850_s28, 3 }
   0xf   : > { %s274_s15 = scalar_lea.vmem %s841_s0, %s636_s12  ;;  %s280_s16 = scalar_lea.vmem %s848_s7, %s636_s12 }
  0x10   : > { %v283_v4 = vld [vmem:[%s274_s15] sm:$0xff]  ;;  %v284_v5 = vld [vmem:[%s274_s15 + $0x8] sm:$0xff]  ;;  %v285_v6 = vld [vmem:[%s274_s15 + $0x10] sm:$0xff]  ;;  %689 = vmatpush3.bf16.msra.mxu1 %v720_v10 }
  0x11   : > { %v287_v7 = vpack.c.bf16 %v284_v5, %v283_v4  ;;  %v286_v8 = vld [vmem:[%s274_s15 + $0x18] sm:$0xff]  ;;  %690 = vmatprep.subr.bf16.mxu1 %v721_v11 }
  0x12   : > { %v288_v9 = vpack.c.bf16 %v286_v8, %v285_v6 }
  0x13   : > { %680 = vmatprep.mubr.msk.bf16.mxu0 %vm312_vm0, %v287_v7 }
  0x14   : > { %681 = vmatmul.mubr.msk.bf16.vlgmr.msra.gmra.mrb[0].mxu0 %vm312_vm0, %v288_v9  ;;  %691 = vmatpush3.bf16.msra.mxu1 %v721_v11 }
  0x15   : > { %697 = vmatpush3.bf16.msra.mxu0 %v722_v12 }
  0x16   : > { %698 = vmatprep.subr.bf16.mxu0 %v723_v13 }
  0x19   : > { %699 = vmatpush3.bf16.msra.mxu0 %v723_v13 }
  0x1a   : > { %700 = vmatprep.subr.bf16.mxu0 %v724_v29 }
  0x1d   : > { %701 = vmatpush3.bf16.msra.mxu0 %v724_v29 }
  0x1e   : > { %702 = vmatprep.subr.bf16.mxu0 %v725_v30 }
  0x21   : > { %703 = vmatpush3.bf16.msra.mxu0 %v725_v30 }
  0xe7   : > { %v682_v15 = vpop.f32.mrb[0].mxu0 }
  0xe8   : > { %v362_v16 = vadd.f32 %v682_v15, %v639_v14  ;;  %v353_v17 = vpop.f32.mrb[1].mxu0 }
  0xe9   : > { %v354_v18 = vadd.f32 %v639_v14, %v353_v17  ;;  %v683_v19 = vpop.f32.mrb[2].mxu0 }
  0xea   : > { %v365_v20 = vadd.f32 %v683_v19, %v639_v14  ;;  %v356_v21 = vpop.f32.mrb[3].mxu0  ;;  %v370_v23 = vmax.f32 %v362_v16, 0.0 }
  0xeb   : > { %v357_v22 = vadd.f32 %v639_v14, %v356_v21  ;;  %v368_v25 = vmax.f32 %v354_v18, 0.0 }
  0xec   : > { %v371_v24 = vmax.f32 %v365_v20, 0.0 }
  0xed   : > { %v369_v26 = vmax.f32 %v357_v22, 0.0 }
  0xee   : > { %v373_v27 = vpack.c.bf16 %v371_v24, %v370_v23 }
  0xef   : > { %v372_v28 = vpack.c.bf16 %v369_v26, %v368_v25 }
  0xf1   : > { %692 = vmatprep.mubr.msk.bf16.mxu1 %vm413_vm1, %v372_v28 }
  0xf2   : > { %693 = vmatmul.mubr.msk.bf16.vlgmr.msra.gmra.mrb[0].mxu1 %vm413_vm1, %v373_v27 }
 0x1c5   : > { %v694_v32 = vpop.f32.mrb[0].mxu1 }
 0x1c6   : > { %v463_v33 = vadd.f32 %v694_v32, %v644_v31  ;;  %v454_v34 = vpop.f32.mrb[1].mxu1 }
 0x1c7   : > { %v455_v35 = vadd.f32 %v644_v31, %v454_v34  ;;  %v695_v36 = vpop.f32.mrb[2].mxu1 }
 0x1c8   : > { %v466_v37 = vadd.f32 %v695_v36, %v644_v31  ;;  %v457_v38 = vpop.f32.mrb[3].mxu1  ;;  %v471_v40 = vmax.f32 %v463_v33, 0.0 }
 0x1c9   : > { %v458_v39 = vadd.f32 %v644_v31, %v457_v38  ;;  %v469_v42 = vmax.f32 %v455_v35, 0.0 }
 0x1ca   : > { %v472_v41 = vmax.f32 %v466_v37, 0.0 }
 0x1cb   : > { %v470_v43 = vmax.f32 %v458_v39, 0.0 }
 0x1cc   : > { %v474_v44 = vpack.c.bf16 %v472_v41, %v471_v40 }
 0x1cd   : > { %v473_v45 = vpack.c.bf16 %v470_v43, %v469_v42 }
 0x1cf   : > { %704 = vmatprep.mubr.msk.bf16.mxu0 %vm413_vm1, %v473_v45 }
 0x1d0   : > { %705 = vmatmul.mubr.msk.bf16.vlgmr.msra.gmra.mrb[4].mxu0 %vm413_vm1, %v474_v44 }
 0x2a3   : > { %v706_v47 = vpop.f32.mrb[4].mxu0 }
 0x2a4   : > { %v554_v48 = vpop.f32.mrb[5].mxu0  ;;  %v563_v53 = vadd.f32 %v706_v47, %v651_v46 }
 0x2a5   : > { %v555_v49 = vadd.f32 %v651_v46, %v554_v48  ;;  %v707_v50 = vpop.f32.mrb[6].mxu0 }
 0x2a6   : > { %v557_v51 = vpop.f32.mrb[7].mxu0  ;;  %v566_v54 = vadd.f32 %v707_v50, %v651_v46  ;;  %572 = vst.msk [vmem:[%s280_s16 + $0x10] sm:$0xff] %vm569_vm2, %v563_v53 }
 0x2a7   : > { %570 = vst.msk [vmem:[%s280_s16] sm:$0xff] %vm569_vm2, %v555_v49  ;;  %v558_v52 = vadd.f32 %v651_v46, %v557_v51 }
 0x2a8   : > { %573 = vst.msk [vmem:[%s280_s16 + $0x18] sm:$0xff] %vm569_vm2, %v566_v54 }
 0x2a9   : > { %571 = vst.msk [vmem:[%s280_s16 + $0x8] sm:$0xff] %vm569_vm2, %v558_v52 }
 0x2aa PF: > { %s17_s24 = sadd.s32 1, %s732_s24  }
 0x2ab   : > { %p14_p4 = scmp.ge.s32.totalorder %s17_s24, 4  }
 0x2ad   :  { %16 = sbr.rel (!%p14_p4) target bundleno = 1 (0x1), region = 78 }

</bundles_post_ra>
